<compile_context>
chip_gen: v5e
topology: v5e:2x2
jax: 0.10.0
libtpu: 0.0.40
codegen_flags: <defaults>
</compile_context>

<pallas_src>
import functools

import jax
import jax.numpy as jnp
from jax.experimental import pallas as pl
from jax.experimental.pallas import tpu as pltpu


def _round_up(x, m):
    return ((x + m - 1) // m) * m


def _const_spec(arr):
    """Full-array, grid-invariant BlockSpec; single-buffered when supported."""
    idx = lambda i: (0, 0)
    try:
        return pl.BlockSpec(arr.shape, idx, pipeline_mode=pl.Buffered(1))
    except (TypeError, AttributeError):   # older jax without pipeline_mode
        return pl.BlockSpec(arr.shape, idx)


def _vmem_limit_bytes(tm, D, NH, compute_dtype, out_dtype, return_hidden):
    """Footprint-derived scoped-VMEM request (+25% margin), not physical VMEM."""
    cb = jnp.dtype(compute_dtype).itemsize
    ob = jnp.dtype(out_dtype).itemsize
    out_cols = NH + (3 * D if return_hidden else 0)
    stream = 2 * tm * D * cb + 2 * tm * out_cols * ob        # double-buffered I/O tiles
    weights = (D * D + 2 * D * D + 2 * D * NH + D * NH) * cb \
              + (D + 2 * D + NH) * 4                          # single-buffered consts
    temps = tm * (3 * D + NH) * 4 + tm * 3 * D * cb           # f32 intermediates + casts
    footprint = stream + weights + temps
    return int(min(max(int(footprint * 1.25) + (4 << 20), 32 << 20), 96 << 20))


# ----------------------------- Pallas kernel ------------------------------ #
def e2da_kernel(h_ref,
                w_sh_ref, b_sh_ref,        # shared_extractor        [D, D], [1, D]
                w_st_ref, b_st_ref,        # span|type fused         [D, 2D], [1, 2D]
                w_hd_ref,                  # block-diag fused heads  [2D, NH]
                w_hm_ref,                  # merged heads (share)    [D, NH]
                b_hd_ref,                  # fused head bias         [1, NH]
                *out_refs, return_hidden):
    D = h_ref.shape[-1]
    h = h_ref[...]                                                  # bf16 [tm, D]

    # H_share = shared_extractor(H)  (f32 MXU accumulation, f32 bias)
    h_share = jnp.dot(h, w_sh_ref[...], preferred_element_type=jnp.float32)
    h_share = h_share + b_sh_ref[...]
    h_share_c = h_share.astype(h.dtype)                             # bf16 [tm, D]

    # H_st = H - H_share  (bf16 arithmetic, no f32 temporaries)
    h_st = h - h_share_c

    # Fused span/type extractors:  st[:, :D] = H_span, st[:, D:] = H_type
    st = jnp.dot(h_st, w_st_ref[...], preferred_element_type=jnp.float32)
    st = st + b_st_ref[...]                                         # f32 [tm, 2D]

    # logits = [H_span|H_type] @ blockdiag(W_sp_h, W_ty_h)
    #        + H_share @ (pad(W_sp_h) + pad(W_ty_h)) + b   (no [tm,2D] concat)
    logits = jnp.dot(st.astype(h.dtype), w_hd_ref[...],
                     preferred_element_type=jnp.float32)
    logits = logits + jnp.dot(h_share_c, w_hm_ref[...],
                              preferred_element_type=jnp.float32)
    logits = logits + b_hd_ref[...]                                 # f32 [tm, NH]

    out_refs[0][...] = logits.astype(out_refs[0].dtype)             # lane-dense slab
    if return_hidden:
        hspan_ref, htype_ref, hshare_ref = out_refs[1:]
        hspan_ref[...] = st[:, :D].astype(hspan_ref.dtype)
        htype_ref[...] = st[:, D:].astype(htype_ref.dtype)
        hshare_ref[...] = h_share_c.astype(hshare_ref.dtype)


def e2da_forward(H, params, *, tm=512, compute_dtype=jnp.bfloat16,
                 out_dtype=jnp.bfloat16, return_hidden=True):
    """H: [B, S, D] float32.

    Returns (span_logits, type_logits, H_span, H_type, H_share) like the torch
    forward (eval mode), in `out_dtype`.  With return_hidden=False returns only
    (span_logits, type_logits) and skips the three D-wide HBM writes.
    """
    B, S, D = H.shape
    (w_sh, b_sh, w_sp, b_sp, w_ty, b_ty, w_sph, b_sph, w_tph, b_tph) = params
    NS = w_sph.shape[1]
    NE = w_tph.shape[1]
    NH = _round_up(NS + NE, 128)            # lane-dense padded head width

    M = B * S
    # Cap the tile so the grid has >= 2 steps when possible (v7x megacore
    # sharding); 16-row aligned for bf16 sublane packing.
    tm = max(16, min(tm, _round_up(-(-M // 2), 16)))
    M_pad = _round_up(M, tm)

    h2d = H.reshape(M, D).astype(compute_dtype)
    if M_pad != M:
        h2d = jnp.pad(h2d, ((0, M_pad - M), (0, 0)))

    # ---- fused / padded weights (prepared once, outside the kernel) --------
    w_shc = w_sh.astype(compute_dtype)                                    # [D, D]
    b_shf = b_sh.astype(jnp.float32)                                      # [1, D]
    w_st = jnp.concatenate([w_sp, w_ty], axis=1).astype(compute_dtype)    # [D, 2D]
    b_st = jnp.concatenate([b_sp, b_ty], axis=1).astype(jnp.float32)      # [1, 2D]
    w_hd = jnp.zeros((2 * D, NH), jnp.float32)
    w_hd = w_hd.at[:D, :NS].set(w_sph).at[D:, NS:NS + NE].set(w_tph)
    w_hd = w_hd.astype(compute_dtype)                                     # [2D, NH]
    w_hm = jnp.zeros((D, NH), jnp.float32)
    w_hm = w_hm.at[:, :NS].set(w_sph).at[:, NS:NS + NE].set(w_tph)
    w_hm = w_hm.astype(compute_dtype)                                     # [D, NH]
    b_hd = jnp.zeros((1, NH), jnp.float32)
    b_hd = b_hd.at[:, :NS].set(b_sph).at[:, NS:NS + NE].set(b_tph)        # [1, NH]

    row_spec = lambda last: pl.BlockSpec((tm, last), lambda i: (i, 0))

    out_shapes = [jax.ShapeDtypeStruct((M_pad, NH), out_dtype)]
    out_specs = [row_spec(NH)]
    if return_hidden:
        out_shapes += [jax.ShapeDtypeStruct((M_pad, D), out_dtype)] * 3
        out_specs += [row_spec(D)] * 3

    cb = jnp.dtype(compute_dtype).itemsize
    ob = jnp.dtype(out_dtype).itemsize
    out_cols = NH + (3 * D if return_hidden else 0)
    flops = 2 * M_pad * (D * D + D * 2 * D + 2 * D * NH + D * NH)
    bytes_accessed = (M_pad * D * cb
                      + (D * D + 2 * D * D + 2 * D * NH + D * NH) * cb
                      + M_pad * out_cols * ob)
    cost = pl.CostEstimate(flops=flops, transcendentals=0,
                           bytes_accessed=bytes_accessed)

    outs = pl.pallas_call(
        functools.partial(e2da_kernel, return_hidden=return_hidden),
        out_shape=tuple(out_shapes),
        grid_spec=pltpu.PrefetchScalarGridSpec(
            num_scalar_prefetch=0,
            grid=(M_pad // tm,),
            in_specs=[
                row_spec(D),                     # H tile (streamed)
                _const_spec(w_shc), _const_spec(b_shf),
                _const_spec(w_st), _const_spec(b_st),
                _const_spec(w_hd), _const_spec(w_hm), _const_spec(b_hd),
            ],
            out_specs=out_specs,
        ),
        compiler_params=pltpu.CompilerParams(
            dimension_semantics=("parallel",),
            vmem_limit_bytes=_vmem_limit_bytes(tm, D, NH, compute_dtype,
                                               out_dtype, return_hidden)),
        cost_estimate=cost,
    )(h2d, w_shc, b_shf, w_st, b_st, w_hd, w_hm, b_hd)

    logits = outs[0]
    span_logits = logits[:M, :NS].reshape(B, S, NS)
    type_logits = logits[:M, NS:NS + NE].reshape(B, S, NE)
    if not return_hidden:
        return span_logits, type_logits
    h_span, h_type, h_share = outs[1], outs[2], outs[3]
    return (span_logits, type_logits,
            h_span[:M].reshape(B, S, D),
            h_type[:M].reshape(B, S, D),
            h_share[:M].reshape(B, S, D))


# ------------------------- deterministic params ---------------------------- #
def make_linear(key, in_dim, out_dim):
    """torch.nn.Linear default init; weight stored pre-transposed [in, out]."""
    kw, kb = jax.random.split(key)
    bound = 1.0 / jnp.sqrt(in_dim)
    w_t = jax.random.uniform(kw, (in_dim, out_dim), jnp.float32, -bound, bound)
    b = jax.random.uniform(kb, (1, out_dim), jnp.float32, -bound, bound)
    return w_t, b


def pure_jax_reference(H, params, compute_dtype=jnp.bfloat16):
    """Reference mirroring the kernel's bf16 quantization points (f32 outputs)."""
    cd = compute_dtype
    q = lambda x: x.astype(cd)
    mm = lambda a, b: jnp.matmul(a.astype(cd), b.astype(cd),
                                 preferred_element_type=jnp.float32)
    (w_sh, b_sh, w_sp, b_sp, w_ty, b_ty, w_sph, b_sph, w_tph, b_tph) = params
    Hq = q(H)
    h_share = mm(Hq, w_sh) + b_sh
    h_share_c = q(h_share)
    h_st = Hq - h_share_c                                   # bf16, like the kernel
    h_span = mm(h_st, w_sp) + b_sp
    h_type = mm(h_st, w_ty) + b_ty
    span_logits = mm(q(h_span), w_sph) + mm(h_share_c, w_sph) + b_sph
    type_logits = mm(q(h_type), w_tph) + mm(h_share_c, w_tph) + b_tph
    return (span_logits, type_logits, h_span, h_type, h_share)


if __name__ == "__main__":
    B, S, D = 2, 24, 128       # small demo shapes (hidden_dim scaled from 1024)
    NUM_SPAN = 3               # ['B', 'I', 'O']
    NUM_ENT = 7                # entity_label_set
    VOCAB = 64

    key = jax.random.PRNGKey(0)
    k_ids, k_emb, k1, k2, k3, k4, k5 = jax.random.split(key, 7)

    # --- stand-in "encoder": deterministic embedding lookup (plain-JAX glue)
    input_ids = jax.random.randint(k_ids, (B, S), 0, VOCAB)
    attention_mask = jnp.ones((B, S), dtype=jnp.int32)   # unused post-encoder
    embed_table = jax.random.normal(k_emb, (VOCAB, D), jnp.float32)
    H = embed_table[input_ids]                            # [B, S, D]

    # --- module parameters
    params = (*make_linear(k1, D, D),          # shared_extractor
              *make_linear(k2, D, D),          # span_extractor
              *make_linear(k3, D, D),          # type_extractor
              *make_linear(k4, D, NUM_SPAN),   # span_head
              *make_linear(k5, D, NUM_ENT))    # type_head

    refs = pure_jax_reference(H, params)

    # Full 5-output forward (exercises multi-step grid + row padding: M=48 ->
    # tm clamps to 32, M_pad=64, 2 grid steps).
    outs = jax.jit(functools.partial(e2da_forward))(H, params)
    outs = jax.block_until_ready(outs)
    for o, r in zip(outs, refs):
        assert o.shape == r.shape, (o.shape, r.shape)
        assert jnp.allclose(o.astype(jnp.float32), r, atol=3e-2, rtol=3e-2), \
            "mismatch vs reference"

    # Logits-only fast path.
    lo = jax.jit(functools.partial(e2da_forward, return_hidden=False))(H, params)
    lo = jax.block_until_ready(lo)
    for o, r in zip(lo, refs[:2]):
        assert o.shape == r.shape, (o.shape, r.shape)
        assert jnp.allclose(o.astype(jnp.float32), r, atol=3e-2, rtol=3e-2), \
            "mismatch vs reference (logits-only)"

    print("KERNEL_OK")
</pallas_src>

<mosaic_0001>
module attributes {stable_mosaic.version = 11 : i64} {
  func.func @e2da_kernel(%arg0: i32, %arg1: memref<32x128xbf16, #tpu.memory_space<vmem>>, %arg2: memref<128x128xbf16, #tpu.memory_space<vmem>>, %arg3: memref<1x128xf32, #tpu.memory_space<vmem>>, %arg4: memref<128x256xbf16, #tpu.memory_space<vmem>>, %arg5: memref<1x256xf32, #tpu.memory_space<vmem>>, %arg6: memref<256x128xbf16, #tpu.memory_space<vmem>>, %arg7: memref<128x128xbf16, #tpu.memory_space<vmem>>, %arg8: memref<1x128xf32, #tpu.memory_space<vmem>>, %arg9: memref<32x128xbf16, #tpu.memory_space<vmem>>, %arg10: memref<32x128xbf16, #tpu.memory_space<vmem>>, %arg11: memref<32x128xbf16, #tpu.memory_space<vmem>>, %arg12: memref<32x128xbf16, #tpu.memory_space<vmem>>) attributes {dimension_semantics = [#tpu.dimension_semantics<parallel>], iteration_bounds = array<i64: 2>, scalar_prefetch = 0 : i64, scratch_operands = 0 : i64, tpu.core_type = #tpu.core_type<tc>, window_params = [{transform_indices = @transform_0, window_bounds = array<i64: 32, 128>}, {pipeline_mode = #tpu.pipeline_mode<synchronous>, transform_indices = @transform_1, window_bounds = array<i64: 128, 128>}, {pipeline_mode = #tpu.pipeline_mode<synchronous>, transform_indices = @transform_2, window_bounds = array<i64: 1, 128>}, {pipeline_mode = #tpu.pipeline_mode<synchronous>, transform_indices = @transform_3, window_bounds = array<i64: 128, 256>}, {pipeline_mode = #tpu.pipeline_mode<synchronous>, transform_indices = @transform_4, window_bounds = array<i64: 1, 256>}, {pipeline_mode = #tpu.pipeline_mode<synchronous>, transform_indices = @transform_5, window_bounds = array<i64: 256, 128>}, {pipeline_mode = #tpu.pipeline_mode<synchronous>, transform_indices = @transform_6, window_bounds = array<i64: 128, 128>}, {pipeline_mode = #tpu.pipeline_mode<synchronous>, transform_indices = @transform_7, window_bounds = array<i64: 1, 128>}, {transform_indices = @transform_8, window_bounds = array<i64: 32, 128>}, {transform_indices = @transform_9, window_bounds = array<i64: 32, 128>}, {transform_indices = @transform_10, window_bounds = array<i64: 32, 128>}, {transform_indices = @transform_11, window_bounds = array<i64: 32, 128>}]} {
    %c0 = arith.constant 0 : index
    %c0_0 = arith.constant 0 : index
    %0 = vector.load %arg1[%c0, %c0_0] : memref<32x128xbf16, #tpu.memory_space<vmem>>, vector<32x128xbf16>
    %c0_1 = arith.constant 0 : index
    %c0_2 = arith.constant 0 : index
    %1 = vector.load %arg2[%c0_1, %c0_2] : memref<128x128xbf16, #tpu.memory_space<vmem>>, vector<128x128xbf16>
    %cst = arith.constant dense<0.000000e+00> : vector<32x128xf32>
    %2 = tpu.matmul %0, %1, %cst {dimension_numbers = #tpu.dot_dimension_numbers<[1], [0], [0], [1], [0, 0, 1, 1], [], []>} : vector<32x128xbf16>, vector<128x128xbf16>, vector<32x128xf32> -> vector<32x128xf32>
    %c0_3 = arith.constant 0 : index
    %c0_4 = arith.constant 0 : index
    %3 = vector.load %arg3[%c0_3, %c0_4] : memref<1x128xf32, #tpu.memory_space<vmem>>, vector<1x128xf32>
    %4 = vector.broadcast %3 : vector<1x128xf32> to vector<32x128xf32>
    %5 = arith.addf %2, %4 : vector<32x128xf32>
    %6 = arith.truncf %5 : vector<32x128xf32> to vector<32x128xbf16>
    %7 = arith.subf %0, %6 : vector<32x128xbf16>
    %c0_5 = arith.constant 0 : index
    %c0_6 = arith.constant 0 : index
    %8 = vector.load %arg4[%c0_5, %c0_6] : memref<128x256xbf16, #tpu.memory_space<vmem>>, vector<128x256xbf16>
    %cst_7 = arith.constant dense<0.000000e+00> : vector<32x256xf32>
    %9 = tpu.matmul %7, %8, %cst_7 {dimension_numbers = #tpu.dot_dimension_numbers<[1], [0], [0], [1], [0, 0, 1, 1], [], []>} : vector<32x128xbf16>, vector<128x256xbf16>, vector<32x256xf32> -> vector<32x256xf32>
    %c0_8 = arith.constant 0 : index
    %c0_9 = arith.constant 0 : index
    %10 = vector.load %arg5[%c0_8, %c0_9] : memref<1x256xf32, #tpu.memory_space<vmem>>, vector<1x256xf32>
    %11 = vector.broadcast %10 : vector<1x256xf32> to vector<32x256xf32>
    %12 = arith.addf %9, %11 : vector<32x256xf32>
    %13 = arith.truncf %12 : vector<32x256xf32> to vector<32x256xbf16>
    %c0_10 = arith.constant 0 : index
    %c0_11 = arith.constant 0 : index
    %14 = vector.load %arg6[%c0_10, %c0_11] : memref<256x128xbf16, #tpu.memory_space<vmem>>, vector<256x128xbf16>
    %cst_12 = arith.constant dense<0.000000e+00> : vector<32x128xf32>
    %15 = tpu.matmul %13, %14, %cst_12 {dimension_numbers = #tpu.dot_dimension_numbers<[1], [0], [0], [1], [0, 0, 1, 1], [], []>} : vector<32x256xbf16>, vector<256x128xbf16>, vector<32x128xf32> -> vector<32x128xf32>
    %c0_13 = arith.constant 0 : index
    %c0_14 = arith.constant 0 : index
    %16 = vector.load %arg7[%c0_13, %c0_14] : memref<128x128xbf16, #tpu.memory_space<vmem>>, vector<128x128xbf16>
    %cst_15 = arith.constant dense<0.000000e+00> : vector<32x128xf32>
    %17 = tpu.matmul %6, %16, %cst_15 {dimension_numbers = #tpu.dot_dimension_numbers<[1], [0], [0], [1], [0, 0, 1, 1], [], []>} : vector<32x128xbf16>, vector<128x128xbf16>, vector<32x128xf32> -> vector<32x128xf32>
    %18 = arith.addf %15, %17 : vector<32x128xf32>
    %c0_16 = arith.constant 0 : index
    %c0_17 = arith.constant 0 : index
    %19 = vector.load %arg8[%c0_16, %c0_17] : memref<1x128xf32, #tpu.memory_space<vmem>>, vector<1x128xf32>
    %20 = vector.broadcast %19 : vector<1x128xf32> to vector<32x128xf32>
    %21 = arith.addf %18, %20 : vector<32x128xf32>
    %22 = arith.truncf %21 : vector<32x128xf32> to vector<32x128xbf16>
    %c0_18 = arith.constant 0 : index
    %c0_19 = arith.constant 0 : index
    %23 = vector.load %arg9[%c0_18, %c0_19] : memref<32x128xbf16, #tpu.memory_space<vmem>>, vector<32x128xbf16>
    tpu.vector_store %arg9[%c0_18, %c0_19], %22 {strides = array<i32>} : memref<32x128xbf16, #tpu.memory_space<vmem>>, vector<32x128xbf16>,
    %24 = vector.extract_strided_slice %12 {offsets = [0, 0], sizes = [32, 128], strides = [1, 1]} : vector<32x256xf32> to vector<32x128xf32>
    %25 = arith.truncf %24 : vector<32x128xf32> to vector<32x128xbf16>
    %c0_20 = arith.constant 0 : index
    %c0_21 = arith.constant 0 : index
    %26 = vector.load %arg10[%c0_20, %c0_21] : memref<32x128xbf16, #tpu.memory_space<vmem>>, vector<32x128xbf16>
    tpu.vector_store %arg10[%c0_20, %c0_21], %25 {strides = array<i32>} : memref<32x128xbf16, #tpu.memory_space<vmem>>, vector<32x128xbf16>,
    %27 = vector.extract_strided_slice %12 {offsets = [0, 128], sizes = [32, 128], strides = [1, 1]} : vector<32x256xf32> to vector<32x128xf32>
    %28 = arith.truncf %27 : vector<32x128xf32> to vector<32x128xbf16>
    %c0_22 = arith.constant 0 : index
    %c0_23 = arith.constant 0 : index
    %29 = vector.load %arg11[%c0_22, %c0_23] : memref<32x128xbf16, #tpu.memory_space<vmem>>, vector<32x128xbf16>
    tpu.vector_store %arg11[%c0_22, %c0_23], %28 {strides = array<i32>} : memref<32x128xbf16, #tpu.memory_space<vmem>>, vector<32x128xbf16>,
    %c0_24 = arith.constant 0 : index
    %c0_25 = arith.constant 0 : index
    %30 = vector.load %arg12[%c0_24, %c0_25] : memref<32x128xbf16, #tpu.memory_space<vmem>>, vector<32x128xbf16>
    tpu.vector_store %arg12[%c0_24, %c0_25], %6 {strides = array<i32>} : memref<32x128xbf16, #tpu.memory_space<vmem>>, vector<32x128xbf16>,
    return
  }
  func.func @transform_0(%arg0: i32) -> (i32, i32) {
    %c0_i32 = arith.constant 0 : i32
    %c0_i32_0 = arith.constant 0 : i32
    return %arg0, %c0_i32 : i32, i32
  }
  func.func @transform_1(%arg0: i32) -> (i32, i32) {
    %c0_i32 = arith.constant 0 : i32
    %c0_i32_0 = arith.constant 0 : i32
    %c0_i32_1 = arith.constant 0 : i32
    return %c0_i32, %c0_i32_0 : i32, i32
  }
  func.func @transform_2(%arg0: i32) -> (i32, i32) {
    %c0_i32 = arith.constant 0 : i32
    %c0_i32_0 = arith.constant 0 : i32
    %c0_i32_1 = arith.constant 0 : i32
    return %c0_i32, %c0_i32_0 : i32, i32
  }
  func.func @transform_3(%arg0: i32) -> (i32, i32) {
    %c0_i32 = arith.constant 0 : i32
    %c0_i32_0 = arith.constant 0 : i32
    %c0_i32_1 = arith.constant 0 : i32
    return %c0_i32, %c0_i32_0 : i32, i32
  }
  func.func @transform_4(%arg0: i32) -> (i32, i32) {
    %c0_i32 = arith.constant 0 : i32
    %c0_i32_0 = arith.constant 0 : i32
    %c0_i32_1 = arith.constant 0 : i32
    return %c0_i32, %c0_i32_0 : i32, i32
  }
  func.func @transform_5(%arg0: i32) -> (i32, i32) {
    %c0_i32 = arith.constant 0 : i32
    %c0_i32_0 = arith.constant 0 : i32
    %c0_i32_1 = arith.constant 0 : i32
    return %c0_i32, %c0_i32_0 : i32, i32
  }
  func.func @transform_6(%arg0: i32) -> (i32, i32) {
    %c0_i32 = arith.constant 0 : i32
    %c0_i32_0 = arith.constant 0 : i32
    %c0_i32_1 = arith.constant 0 : i32
    return %c0_i32, %c0_i32_0 : i32, i32
  }
  func.func @transform_7(%arg0: i32) -> (i32, i32) {
    %c0_i32 = arith.constant 0 : i32
    %c0_i32_0 = arith.constant 0 : i32
    %c0_i32_1 = arith.constant 0 : i32
    return %c0_i32, %c0_i32_0 : i32, i32
  }
  func.func @transform_8(%arg0: i32) -> (i32, i32) {
    %c0_i32 = arith.constant 0 : i32
    %c0_i32_0 = arith.constant 0 : i32
    return %arg0, %c0_i32 : i32, i32
  }
  func.func @transform_9(%arg0: i32) -> (i32, i32) {
    %c0_i32 = arith.constant 0 : i32
    %c0_i32_0 = arith.constant 0 : i32
    return %arg0, %c0_i32 : i32, i32
  }
  func.func @transform_10(%arg0: i32) -> (i32, i32) {
    %c0_i32 = arith.constant 0 : i32
    %c0_i32_0 = arith.constant 0 : i32
    return %arg0, %c0_i32 : i32, i32
  }
  func.func @transform_11(%arg0: i32) -> (i32, i32) {
    %c0_i32 = arith.constant 0 : i32
    %c0_i32_0 = arith.constant 0 : i32
    return %arg0, %c0_i32 : i32, i32
  }
}

</mosaic_0001>

<bundles_post_ra>
// kernel: e2da_forward.1
= control target key start
LH: loop header
LB: loop body
LE: loop exit
PB: predicated region body
PF: predicated region fallthrough
CT: control target
= control target key end

     0   :  { %s1555_s17 = smov 0   ;;  %s1799_s0 = inlined_call_operand.vmem [shape: bf16[64,128], index: 0, kind: input, shape index: {}]   ;;  %s1800_s1 = inlined_call_operand.vmem [shape: bf16[128,128], index: 1, kind: input, shape index: {}]   ;;  %s1801_s2 = inlined_call_operand.vmem [shape: f32[1,128], index: 2, kind: input, shape index: {}]   ;;  %s1802_s3 = inlined_call_operand.vmem [shape: bf16[128,256], index: 3, kind: input, shape index: {}]   ;;  %s1803_s4 = inlined_call_operand.vmem [shape: f32[1,256], index: 4, kind: input, shape index: {}]   ;;  %s1804_s5 = inlined_call_operand.vmem [shape: bf16[256,128], index: 5, kind: input, shape index: {}]   ;;  %s1805_s6 = inlined_call_operand.vmem [shape: bf16[128,128], index: 6, kind: input, shape index: {}]   ;;  %s1806_s7 = inlined_call_operand.vmem [shape: f32[1,128], index: 7, kind: input, shape index: {}]   ;;  %s1807_s8 = inlined_call_operand.vmem [shape: bf16[64,128], index: 8, kind: output, shape index: {0}]   ;;  %s1808_s9 = inlined_call_operand.vmem [shape: bf16[64,128], index: 9, kind: output, shape index: {1}]   ;;  %s1809_s10 = inlined_call_operand.vmem [shape: bf16[64,128], index: 10, kind: output, shape index: {2}]   ;;  %s1810_s11 = inlined_call_operand.vmem [shape: bf16[64,128], index: 11, kind: output, shape index: {3}]  }
   0x1 LB: > { %s1150_s18 = sadd.s32 4294967295, %s1493_s17   ;;  %p1154_p0 = scmp.ge.s32.totalorder %s1493_s17, 1  ;;  %s1493_s17 = sphi %s1555_s17, %s22_s17  }
   0x2   : > { %p345_p1 = scmp.lt.s32.totalorder %s1493_s17, 3 }
   0x4   : > { %p346_p2 = pnand %p1154_p0, %p345_p1 }
   0x5   : > { %s1155_s27 = sshll.u32 (!%p346_p2), %s1150_s18, 2 }
   0x6   : > { %349 = sbr.rel (%p346_p2) target bundleno = 494 (0x1ee), region = 52  ;;  %p401_p3 = scmp.lt.s32.totalorder (!%p346_p2), %s1155_s27, 7 }
   0xb   : > { %v1376_v0 = vld [vmem:[%s1800_s1 + $0x38] sm:$0xff]  ;;  %v1375_v1 = vld [vmem:[%s1800_s1 + $0x30] sm:$0xff]  ;;  %v1374_v2 = vld [vmem:[%s1800_s1 + $0x28] sm:$0xff]  ;;  %s1812_s27 = smov (!%p401_p3, %s1155_s27), 7 }
   0xc   : > { %514 = vmatpush.bf16.msra.mxu0 %v1376_v0  ;;  %v1373_v3 = vld [vmem:[%s1800_s1 + $0x20] sm:$0xff]  ;;  %v1372_v4 = vld [vmem:[%s1800_s1 + $0x18] sm:$0xff]  ;;  %v1371_v5 = vld [vmem:[%s1800_s1 + $0x10] sm:$0xff]  ;;  %s1626_s28 = sshll.u32 %s1812_s27, 2 }
   0xd   : > { %v1416_v6 = vld [vmem:[%s1805_s6 + $0x38] sm:$0xff]  ;;  %v1263_v7 = vld [vmem:[%s1802_s3 + $0x70] sm:$0xf]  ;;  %v1391_v10 = vld [vmem:[%s1802_s3 + $0x74] sm:$0xf]  ;;  %s1638_s27 = scalar_lea.vmem %s1799_s0, %s1626_s28  ;;  %s1743_s18 = scalar_lea.vmem %s1810_s11, %s1626_s28 }
   0xe   : > { %v1392_v8 = vld [vmem:[%s1802_s3 + $0x74] sm:$0xf0]  ;;  %v1265_v11 = vld [vmem:[%s1802_s3 + $0x78] sm:$0xf0]  ;;  %v1415_v12 = vld [vmem:[%s1805_s6 + $0x30] sm:$0xff]  ;;  %803 = vmatpush.bf16.msra.mxu3 %v1416_v6  ;;  %s416_s26 = scalar_lea.vmem %s1808_s9, %s1626_s28  ;;  %s422_s12 = scalar_lea.vmem %s1809_s10, %s1626_s28 }
   0xf   : > { %v1264_v9 = vor.u32 %v1392_v8, %v1263_v7  ;;  %v1268_v13 = vor.u32 %v1391_v10, %v1265_v11  ;;  %v1255_v14 = vld [vmem:[%s1802_s3 + $0x60] sm:$0xf]  ;;  %v1390_v15 = vld [vmem:[%s1802_s3 + $0x64] sm:$0xf0]  ;;  %v1389_v16 = vld [vmem:[%s1802_s3 + $0x64] sm:$0xf]  ;;  %s410_s19 = scalar_lea.vmem %s1807_s8, %s1626_s28 }
  0x10   : > { %515 = vmatpush.bf16.msra.mxu0 %v1375_v1  ;;  %v1256_v17 = vor.u32 %v1390_v15, %v1255_v14  ;;  %v1257_v18 = vld [vmem:[%s1802_s3 + $0x68] sm:$0xf0]  ;;  %v1247_v20 = vld [vmem:[%s1802_s3 + $0x50] sm:$0xf]  ;;  %v1388_v21 = vld [vmem:[%s1802_s3 + $0x54] sm:$0xf0] }
  0x11   : > { %653 = vmatpush.bf16.msra.mxu1 %v1264_v9  ;;  %672 = vmatpush.bf16.msra.mxu2 %v1268_v13  ;;  %v1260_v19 = vor.u32 %v1389_v16, %v1257_v18  ;;  %v1370_v22 = vld [vmem:[%s1800_s1 + $0x8] sm:$0xff]  ;;  %v1387_v23 = vld [vmem:[%s1802_s3 + $0x54] sm:$0xf]  ;;  %v1249_v24 = vld [vmem:[%s1802_s3 + $0x58] sm:$0xf0]  ;;  %v1248_v26 = vor.u32 %v1388_v21, %v1247_v20 }
  0x12   : > { %804 = vmatpush.bf16.msra.mxu3 %v1415_v12  ;;  %v1414_v25 = vld [vmem:[%s1805_s6 + $0x28] sm:$0xff]  ;;  %v1252_v27 = vor.u32 %v1387_v23, %v1249_v24  ;;  %v1369_v28 = vld [vmem:[%s1800_s1] sm:$0xff]  ;;  %v1412_v38 = vld [vmem:[%s1805_s6 + $0x18] sm:$0xff] }
  0x13   : > { %v1413_v29 = vld [vmem:[%s1805_s6 + $0x20] sm:$0xff]  ;;  %v1368_v31 = vld [vmem:[%s1638_s27 + $0x8] sm:$0xff]  ;;  %v1231_v39 = vld [vmem:[%s1802_s3 + $0x30] sm:$0xf] }
  0x14   : > { %516 = vmatpush.bf16.msra.mxu0 %v1374_v2  ;;  %v1367_v30 = vld [vmem:[%s1638_s27] sm:$0xff]  ;;  %v1386_v33 = vld [vmem:[%s1802_s3 + $0x44] sm:$0xf0]  ;;  %v1241_v36 = vld [vmem:[%s1802_s3 + $0x48] sm:$0xf0] }
  0x15   : > { %654 = vmatpush.bf16.msra.mxu1 %v1256_v17  ;;  %673 = vmatpush.bf16.msra.mxu2 %v1260_v19  ;;  %v1239_v32 = vld [vmem:[%s1802_s3 + $0x40] sm:$0xf]  ;;  %v1385_v34 = vld [vmem:[%s1802_s3 + $0x44] sm:$0xf]  ;;  %v1384_v40 = vld [vmem:[%s1802_s3 + $0x34] sm:$0xf0] }
  0x16   : > { %805 = vmatpush.bf16.msra.mxu3 %v1414_v25  ;;  %v1240_v35 = vor.u32 %v1386_v33, %v1239_v32  ;;  %v1244_v37 = vor.u32 %v1385_v34, %v1241_v36  ;;  %v1383_v41 = vld [vmem:[%s1802_s3 + $0x34] sm:$0xf]  ;;  %v1232_v42 = vor.u32 %v1384_v40, %v1231_v39  ;;  %v1233_v43 = vld [vmem:[%s1802_s3 + $0x38] sm:$0xf0]  ;;  %v1223_v46 = vld [vmem:[%s1802_s3 + $0x20] sm:$0xf] }
  0x17   : > { %v1236_v44 = vor.u32 %v1383_v41, %v1233_v43  ;;  %v1411_v45 = vld [vmem:[%s1805_s6 + $0x10] sm:$0xff]  ;;  %v1382_v47 = vld [vmem:[%s1802_s3 + $0x24] sm:$0xf0]  ;;  %v1381_v48 = vld [vmem:[%s1802_s3 + $0x24] sm:$0xf] }
  0x18   : > { %517 = vmatpush.bf16.msra.mxu0 %v1373_v3  ;;  %v1224_v49 = vor.u32 %v1382_v47, %v1223_v46  ;;  %v1225_v50 = vld [vmem:[%s1802_s3 + $0x28] sm:$0xf0]  ;;  %v1215_v53 = vld [vmem:[%s1802_s3 + $0x10] sm:$0xf]  ;;  %v1380_v54 = vld [vmem:[%s1802_s3 + $0x14] sm:$0xf0] }
  0x19   : > { %655 = vmatpush.bf16.msra.mxu1 %v1248_v26  ;;  %674 = vmatpush.bf16.msra.mxu2 %v1252_v27  ;;  %v1228_v51 = vor.u32 %v1381_v48, %v1225_v50  ;;  %v1410_v52 = vld [vmem:[%s1805_s6 + $0x8] sm:$0xff]  ;;  %v1379_v55 = vld [vmem:[%s1802_s3 + $0x14] sm:$0xf]  ;;  %v1216_v56 = vor.u32 %v1380_v54, %v1215_v53  ;;  %v1217_v57 = vld [vmem:[%s1802_s3 + $0x18] sm:$0xf0] }
  0x1a   : > { %806 = vmatpush.bf16.msra.mxu3 %v1413_v29  ;;  %v1220_v58 = vor.u32 %v1379_v55, %v1217_v57  ;;  %v1409_v59 = vld [vmem:[%s1805_s6] sm:$0xff]  ;;  %v1378_v61 = vld [vmem:[%s1802_s3 + $0x4] sm:$0xf0]  ;;  %v1209_v0 = vld [vmem:[%s1802_s3 + $0x8] sm:$0xf0] }
  0x1b   : > { %v1207_v60 = vld [vmem:[%s1802_s3] sm:$0xf]  ;;  %v1377_v62 = vld [vmem:[%s1802_s3 + $0x4] sm:$0xf]  ;;  %v1408_v6 = vld [vmem:[%s1804_s5 + $0x78] sm:$0xff] }
  0x1c   : > { %518 = vmatpush.bf16.msra.mxu0 %v1372_v4  ;;  %v1208_v63 = vor.u32 %v1378_v61, %v1207_v60  ;;  %v1212_v1 = vor.u32 %v1377_v62, %v1209_v0  ;;  %v1485_v2 = vld [vmem:[%s1801_s2] ss:$0 sm:$0xff]  ;;  %v1399_v7 = vld [vmem:[%s1804_s5 + $0x30] sm:$0xff]  ;;  %v1398_v13 = vld [vmem:[%s1804_s5 + $0x28] sm:$0xff] }
  0x1d   : > { %656 = vmatpush.bf16.msra.mxu1 %v1240_v35  ;;  %675 = vmatpush.bf16.msra.mxu2 %v1244_v37  ;;  %v1407_v8 = vld [vmem:[%s1804_s5 + $0x70] sm:$0xff]  ;;  %v430_v10 = vld [vmem:[%s1638_s27] sm:$0xff]   ;;  %v1406_v14 = vld [vmem:[%s1804_s5 + $0x68] sm:$0xff] }
  0x1e   : > { %807 = vmatpush.bf16.msra.mxu3 %v1412_v38  ;;  %v537_v15 = vunpack.c.l.bf16 %v430_v10  ;;  %v538_v19 = vunpack.c.h.bf16 %v430_v10  ;;  %v1397_v23 = vld [vmem:[%s1804_s5 + $0x20] sm:$0xff]  ;;  %v1396_v29 = vld [vmem:[%s1804_s5 + $0x18] sm:$0xff]  ;;  %v432_v32 = vld [vmem:[%s1638_s27 + $0x8] sm:$0xff]  }
  0x1f   : > { %v539_v35 = vunpack.c.l.bf16 %v432_v32  ;;  %v540_v39 = vunpack.c.h.bf16 %v432_v32  ;;  %v1405_v47 = vld [vmem:[%s1804_s5 + $0x60] sm:$0xff]  ;;  %v1395_v48 = vld [vmem:[%s1804_s5 + $0x10] sm:$0xff]  ;;  %v1394_v50 = vld [vmem:[%s1804_s5 + $0x8] sm:$0xff] }
  0x20   : > { %519 = vmatpush.bf16.msra.mxu0 %v1371_v5  ;;  %v1400_v5 = vld [vmem:[%s1804_s5 + $0x38] sm:$0xff]  ;;  %v1402_v53 = vld [vmem:[%s1804_s5 + $0x48] sm:$0xff]  ;;  %v1401_v54 = vld [vmem:[%s1804_s5 + $0x40] sm:$0xff] }
  0x21   : > { %657 = vmatpush.bf16.msra.mxu1 %v1232_v42  ;;  %676 = vmatpush.bf16.msra.mxu2 %v1236_v44 }
  0x22   : > { %808 = vmatpush.bf16.msra.mxu3 %v1411_v45 }
  0x24   : > { %520 = vmatpush.bf16.msra.mxu0 %v1370_v22 }
  0x25   : > { %658 = vmatpush.bf16.msra.mxu1 %v1224_v49  ;;  %677 = vmatpush.bf16.msra.mxu2 %v1228_v51  ;;  %v1404_v49 = vld [vmem:[%s1804_s5 + $0x58] sm:$0xff]  ;;  %v1403_v51 = vld [vmem:[%s1804_s5 + $0x50] sm:$0xff] }
  0x26   : > { %809 = vmatpush.bf16.msra.mxu3 %v1410_v52  ;;  %v1393_v52 = vld [vmem:[%s1804_s5] sm:$0xff] }
  0x28   : > { %521 = vmatpush.bf16.msra.mxu0 %v1369_v28 }
  0x29   : > { %659 = vmatpush.bf16.msra.mxu1 %v1216_v56  ;;  %678 = vmatpush.bf16.msra.mxu2 %v1220_v58  ;;  %v567_v56 = vld [vmem:[%s1803_s4] sm:$0x3] }
  0x2a   : > { %810 = vmatpush.bf16.msra.mxu3 %v1409_v59  ;;  %v569_v57 = vperm.slane %v567_v56, 0  ;;  %v570_v62 = vperm.slane %v567_v56, 1 }
  0x2b   : > { %522 = vmatmul.bf16.vlgmr.msra.gmra.mxu0 %v1367_v30 }
  0x2c   : > { %918 = vmatpush.bf16.msrb.mxu0 %v1400_v5 }
  0x2d   : > { %660 = vmatpush.bf16.msra.mxu1 %v1208_v63  ;;  %679 = vmatpush.bf16.msra.mxu2 %v1212_v1 }
  0x2e   : > { %1469 = vmatpush.bf16.msrb.mxu3 %v1408_v6 }
  0x30   : > { %919 = vmatpush.bf16.msrb.mxu0 %v1399_v7 }
  0x31   : > { %937 = vmatpush.bf16.msrb.mxu1 %v1408_v6  ;;  %1461 = vmatpush.bf16.msrb.mxu2 %v1400_v5 }
  0x32   : > { %1470 = vmatpush.bf16.msrb.mxu3 %v1407_v8 }
  0x34   : > { %920 = vmatpush.bf16.msrb.mxu0 %v1398_v13 }
  0x35   : > { %938 = vmatpush.bf16.msrb.mxu1 %v1407_v8  ;;  %1462 = vmatpush.bf16.msrb.mxu2 %v1399_v7 }
  0x36   : > { %1471 = vmatpush.bf16.msrb.mxu3 %v1406_v14 }
  0x38   : > { %921 = vmatpush.bf16.msrb.mxu0 %v1397_v23 }
  0x39   : > { %939 = vmatpush.bf16.msrb.mxu1 %v1406_v14  ;;  %1463 = vmatpush.bf16.msrb.mxu2 %v1398_v13 }
  0x3a   : > { %1472 = vmatpush.bf16.msrb.mxu3 %v1405_v47 }
  0x3b   : > { %527 = vmatmul.bf16.gmra.mxu0 %v1368_v31 }
  0x3c   : > { %922 = vmatpush.bf16.msrb.mxu0 %v1396_v29 }
  0x3d   : > { %1464 = vmatpush.bf16.msrb.mxu2 %v1397_v23  ;;  %940 = vmatpush.bf16.msrb.mxu1 %v1405_v47 }
  0x3e   : > { %1473 = vmatpush.bf16.msrb.mxu3 %v1404_v49 }
  0x40   : > { %923 = vmatpush.bf16.msrb.mxu0 %v1395_v48 }
  0x41   : > { %1465 = vmatpush.bf16.msrb.mxu2 %v1396_v29  ;;  %941 = vmatpush.bf16.msrb.mxu1 %v1404_v49 }
  0x42   : > { %1474 = vmatpush.bf16.msrb.mxu3 %v1403_v51 }
  0x44   : > { %924 = vmatpush.bf16.msrb.mxu0 %v1394_v50 }
  0x45   : > { %1466 = vmatpush.bf16.msrb.mxu2 %v1395_v48  ;;  %942 = vmatpush.bf16.msrb.mxu1 %v1403_v51 }
  0x46   : > { %1475 = vmatpush.bf16.msrb.mxu3 %v1402_v53 }
  0x48   : > { %925 = vmatpush.bf16.msrb.mxu0 %v1393_v52 }
  0x49   : > { %1467 = vmatpush.bf16.msrb.mxu2 %v1394_v50  ;;  %943 = vmatpush.bf16.msrb.mxu1 %v1402_v53 }
  0x4a   : > { %1476 = vmatpush.bf16.msrb.mxu3 %v1401_v54 }
  0x4d   : > { %1468 = vmatpush.bf16.msrb.mxu2 %v1393_v52  ;;  %944 = vmatpush.bf16.msrb.mxu1 %v1401_v54 }
  0xa8   : > { %v523_v3 = vpop.f32.mrf.mxu0 }
  0xa9   : > { %v524_v4 = vadd.f32 %v1485_v2, %v523_v3 }
  0xab   : > { %v533_v9 = vpack.c.bf16 %v524_v4, %v524_v4 }
  0xad   : > { %v541_v16 = vunpack.c.l.bf16 %v533_v9  ;;  %v747_v21 = vunpack.c.l.b16 %v533_v9 }
  0xaf   : > { %v545_v25 = vsub.f32 %v537_v15, %v541_v16 }
  0xb0   : > { %v525_v11 = vpop.f32.mrf.mxu0 }
  0xb1   : > { %v526_v12 = vadd.f32 %v1485_v2, %v525_v11 }
  0xb3   : > { %v534_v17 = vpack.c.bf16 %v526_v12, %v526_v12  ;;  %v1450_v18 = vpack.c.bf16 %v526_v12, %v524_v4 }
  0xb5   : > { %v542_v20 = vunpack.c.l.bf16 %v534_v17  ;;  %1451 = vst [vmem:[%s1743_s18] sm:$0xff] %v1450_v18   ;;  %v748_v22 = vunpack.c.l.b16 %v534_v17 }
  0xb7   : > { %v751_v24 = vpack.c.b16 %v748_v22, %v747_v21  ;;  %v546_v26 = vsub.f32 %v538_v19, %v542_v20  ;;  %v1486_v22 = vld [vmem:[%s1806_s7] ss:$0 sm:$0xff] }
  0xb8   : > { %v528_v27 = vpop.f32.mrf.mxu0 }
  0xb9   : > { %811 = vmatmul.bf16.vlgmr.msra.gmra.mxu3 %v751_v24  ;;  %v549_v28 = vpack.c.bf16 %v546_v26, %v545_v25  ;;  %v529_v30 = vadd.f32 %v1485_v2, %v528_v27 }
  0xbb   : > { %661 = vmatmul.bf16.vlgmr.msra.gmra.mxu1 %v549_v28  ;;  %680 = vmatmul.bf16.vlgmr.msra.gmra.mxu2 %v549_v28  ;;  %v535_v31 = vpack.c.bf16 %v529_v30, %v529_v30 }
  0xbd   : > { %v543_v36 = vunpack.c.l.bf16 %v535_v31  ;;  %v749_v41 = vunpack.c.l.b16 %v535_v31 }
  0xbf   : > { %v547_v44 = vsub.f32 %v539_v35, %v543_v36 }
  0xc0   : > { %v530_v33 = vpop.f32.mrf.mxu0 }
  0xc1   : > { %v531_v34 = vadd.f32 %v1485_v2, %v530_v33 }
  0xc3   : > { %v536_v37 = vpack.c.bf16 %v531_v34, %v531_v34  ;;  %v1455_v38 = vpack.c.bf16 %v531_v34, %v529_v30 }
  0xc5   : > { %v544_v40 = vunpack.c.l.bf16 %v536_v37  ;;  %1460 = vst [vmem:[%s1743_s18 + $0x8] sm:$0xff] %v1455_v38   ;;  %v750_v42 = vunpack.c.l.b16 %v536_v37 }
  0xc7   : > { %v752_v43 = vpack.c.b16 %v750_v42, %v749_v41  ;;  %v548_v45 = vsub.f32 %v540_v39, %v544_v40 }
  0xc9   : > { %816 = vmatmul.bf16.gmra.mxu3 %v752_v43  ;;  %v550_v46 = vpack.c.bf16 %v548_v45, %v547_v44 }
  0xcb   : > { %666 = vmatmul.bf16.gmra.mxu1 %v550_v46  ;;  %685 = vmatmul.bf16.gmra.mxu2 %v550_v46 }
 0x138   : > { %v662_v55 = vpop.f32.mrf.mxu1 }
 0x139   : > { %v663_v60 = vadd.f32 %v662_v55, %v569_v57 }
 0x13c   : > { %v812_v14 = vpop.f32.mrf.mxu3 }
 0x13e   : > { %v681_v58 = vpop.f32.mrf.mxu2 }
 0x13f   : > { %v682_v1 = vadd.f32 %v681_v58, %v570_v62 }
 0x140   : > { %v664_v59 = vpop.f32.mrf.mxu1 }
 0x141   : > { %v665_v61 = vadd.f32 %v664_v59, %v569_v57 }
 0x143   : > { %v691_v63 = vpack.c.bf16 %v665_v61, %v663_v60 }
 0x144   : > { %v814_v15 = vpop.f32.mrf.mxu3 }
 0x145   : > { %1431 = vst [vmem:[%s416_s26] sm:$0xff] %v691_v63   ;;  %926 = vmatmul.bf16.vlgmr.msrb.gmra.mxu0 %v691_v63 }
 0x146   : > { %v683_v0 = vpop.f32.mrf.mxu2 }
 0x147   : > { %v684_v2 = vadd.f32 %v683_v0, %v570_v62 }
 0x148   : > { %v667_v3 = vpop.f32.mrf.mxu1 }
 0x149   : > { %v692_v4 = vpack.c.bf16 %v684_v2, %v682_v1  ;;  %v668_v7 = vadd.f32 %v667_v3, %v569_v57 }
 0x14b   : > { %1441 = vst [vmem:[%s422_s12] sm:$0xff] %v692_v4   ;;  %945 = vmatmul.bf16.vlgmr.msrb.gmra.mxu1 %v692_v4 }
 0x14c   : > { %v817_v18 = vpop.f32.mrf.mxu3 }
 0x14e   : > { %v686_v5 = vpop.f32.mrf.mxu2 }
 0x14f   : > { %v687_v11 = vadd.f32 %v686_v5, %v570_v62 }
 0x150   : > { %v669_v6 = vpop.f32.mrf.mxu1 }
 0x151   : > { %v670_v8 = vadd.f32 %v669_v6, %v569_v57 }
 0x153   : > { %v693_v9 = vpack.c.bf16 %v670_v8, %v668_v7 }
 0x154   : > { %v819_v29 = vpop.f32.mrf.mxu3 }
 0x155   : > { %1458 = vst [vmem:[%s416_s26 + $0x8] sm:$0xff] %v693_v9   ;;  %931 = vmatmul.bf16.vlgmr.msrb.gmra.mxu2 %v693_v9 }
 0x156   : > { %v688_v10 = vpop.f32.mrf.mxu2 }
 0x157   : > { %v689_v12 = vadd.f32 %v688_v10, %v570_v62 }
 0x159   : > { %v694_v13 = vpack.c.bf16 %v689_v12, %v687_v11 }
 0x15b   : > { %1459 = vst [vmem:[%s422_s12 + $0x8] sm:$0xff] %v694_v13   ;;  %950 = vmatmul.bf16.vlgmr.msrb.gmra.mxu3 %v694_v13 }
 0x1c2   : > { %v927_v16 = vpop.f32.mrf.mxu0 }
 0x1c3   : > { %v928_v20 = vadd.f32 %v927_v16, %v812_v14 }
 0x1c8   : > { %v946_v17 = vpop.f32.mrf.mxu1 }
 0x1c9   : > { %v947_v21 = vadd.f32 %v946_v17, %v928_v20 }
 0x1ca   : > { %v929_v19 = vpop.f32.mrf.mxu0 }
 0x1cb   : > { %v930_v23 = vadd.f32 %v929_v19, %v814_v15  ;;  %v960_v26 = vadd.f32 %v1486_v22, %v947_v21 }
 0x1d0   : > { %v948_v24 = vpop.f32.mrf.mxu1 }
 0x1d1   : > { %v949_v25 = vadd.f32 %v948_v24, %v930_v23 }
 0x1d3   : > { %v961_v27 = vadd.f32 %v1486_v22, %v949_v25 }
 0x1d5   : > { %v1420_v28 = vpack.c.bf16 %v961_v27, %v960_v26 }
 0x1d7   : > { %1421 = vst [vmem:[%s410_s19] sm:$0xff] %v1420_v28  }
 0x1d8   : > { %v932_v30 = vpop.f32.mrf.mxu2 }
 0x1d9   : > { %v933_v33 = vadd.f32 %v932_v30, %v817_v18 }
 0x1de   : > { %v951_v31 = vpop.f32.mrf.mxu3 }
 0x1df   : > { %v952_v34 = vadd.f32 %v951_v31, %v933_v33 }
 0x1e0   : > { %v934_v32 = vpop.f32.mrf.mxu2 }
 0x1e1   : > { %v935_v35 = vadd.f32 %v934_v32, %v819_v29  ;;  %v962_v38 = vadd.f32 %v1486_v22, %v952_v34 }
 0x1e6   : > { %v953_v36 = vpop.f32.mrf.mxu3 }
 0x1e7   : > { %v954_v37 = vadd.f32 %v953_v36, %v935_v35 }
 0x1e9   : > { %v963_v39 = vadd.f32 %v1486_v22, %v954_v37 }
 0x1eb   : > { %v1425_v40 = vpack.c.bf16 %v963_v39, %v962_v38 }
 0x1ed   : > { %1457 = vst [vmem:[%s410_s19 + $0x8] sm:$0xff] %v1425_v40  }
 0x1ee PF: > { %s22_s17 = sadd.s32 1, %s1493_s17  }
 0x1ef   : > { %p19_p4 = scmp.ge.s32.totalorder %s22_s17, 4  }
 0x1f1   :  { %21 = sbr.rel (!%p19_p4) target bundleno = 1 (0x1), region = 118 }

</bundles_post_ra>
